<compile_context>
chip_gen: v6e
topology: v6e:2x2x1
jax: 0.10.0
libtpu: 0.0.40
codegen_flags: <defaults>
</compile_context>

<pallas_src>
import functools

import jax
import jax.numpy as jnp
import numpy as np
from jax import lax
from jax.experimental import pallas as pl
from jax.experimental.pallas import tpu as pltpu

RMS_EPS = float(jnp.finfo(jnp.float32).eps)   # torch.nn.RMSNorm(eps=None) -> finfo(dtype).eps
IN_EPS = 1e-5                                 # torch.nn.InstanceNorm2d default eps

LANE = 128
SUBLANE = 8
TK_CAP = 2048            # max K-tile width (lanes)
BT_CAP = 256             # max batch-tile height (sublanes)
VMEM_BUDGET = 24 << 20   # target double-buffered working set (fits every generation)


def _round_up(a, b):
    return (a + b - 1) // b * b


# ---------------------------------------------------------------------------
# Kernel 1: fused RMSNorm([C,H,W]) + flatten + Linear   ('layernorm' path)
# RMS scale is a per-row scalar, so (s*x) @ W' + b == s*(x @ W') + b.
# Single pass over x: accumulate x_k @ W'_k and sum(x_k^2) per K tile; apply
# rsqrt + bias at the last K step.
# ---------------------------------------------------------------------------
def _rmsnorm_linear_kernel(x_ref, w_ref, b_ref, o_ref, acc_ref, ssq_ref, *, inv_f):
    k = pl.program_id(1)

    @pl.when(k == 0)
    def _():
        acc_ref[...] = jnp.zeros_like(acc_ref)
        ssq_ref[...] = jnp.zeros_like(ssq_ref)

    x = x_ref[...]                                                      # [bt, tk] f32
    acc_ref[...] += jnp.dot(x.astype(w_ref.dtype), w_ref[...],
                            preferred_element_type=jnp.float32)
    ssq_ref[...] += jnp.sum(x * x, axis=-1, keepdims=True)

    @pl.when(k == pl.num_programs(1) - 1)
    def _():
        scale = lax.rsqrt(ssq_ref[...] * inv_f + RMS_EPS)               # EUP
        o_ref[...] = (acc_ref[...] * scale + b_ref[...]).astype(o_ref.dtype)


# ---------------------------------------------------------------------------
# Kernel 2: fused InstanceNorm2d + flatten + Linear   ('instancenorm' path)
# n_ch whole channels per K step (tk == n_ch * HWp, lane-aligned): per-channel
# stats over the lane axis, normalize, one (bt, tk)@(tk, O) matmul, accumulate.
# gamma is folded into W rows, beta into the bias (done offline).
# Padded lanes (only when HW % 128 != 0) are zero in x and hit zero W rows, so
# only the variance needs the precomputed mask.
# ---------------------------------------------------------------------------
def _instnorm_linear_kernel(x_ref, w_ref, b_ref, *rest, n_ch, hwp, inv_hw, use_mask):
    if use_mask:
        mask_ref, o_ref, acc_ref = rest
    else:
        o_ref, acc_ref = rest
    k = pl.program_id(1)

    @pl.when(k == 0)
    def _():
        acc_ref[...] = jnp.zeros_like(acc_ref)

    x = x_ref[...]                                                      # [bt, n_ch*hwp]
    bt = x.shape[0]
    xg = x.reshape(bt, n_ch, hwp)                                       # lane-aligned, free
    mean = jnp.sum(xg, axis=-1, keepdims=True) * inv_hw                 # padded lanes are 0
    xc = xg - mean
    xv = xc * mask_ref[...].reshape(1, n_ch, hwp) if use_mask else xc
    var = jnp.sum(xv * xv, axis=-1, keepdims=True) * inv_hw             # biased, like torch
    y = xc * lax.rsqrt(var + IN_EPS)                                    # padded lanes -> zero W rows
    acc_ref[...] += jnp.dot(y.reshape(bt, n_ch * hwp).astype(w_ref.dtype), w_ref[...],
                            preferred_element_type=jnp.float32)

    @pl.when(k == pl.num_programs(1) - 1)
    def _():
        o_ref[...] = (acc_ref[...] + b_ref[...]).astype(o_ref.dtype)


# ---------------------------------------------------------------------------
# Kernel 3: plain flatten + Linear (identity pre-normalization)
# ---------------------------------------------------------------------------
def _linear_kernel(x_ref, w_ref, b_ref, o_ref, acc_ref):
    k = pl.program_id(1)

    @pl.when(k == 0)
    def _():
        acc_ref[...] = jnp.zeros_like(acc_ref)

    acc_ref[...] += jnp.dot(x_ref[...].astype(w_ref.dtype), w_ref[...],
                            preferred_element_type=jnp.float32)

    @pl.when(k == pl.num_programs(1) - 1)
    def _():
        o_ref[...] = (acc_ref[...] + b_ref[...]).astype(o_ref.dtype)


# ---------------------------------------------------------------------------
# Shared tiled pipeline: grid = (B tiles ["parallel"], K tiles ["arbitrary"])
# ---------------------------------------------------------------------------
def _fused_pipeline(kernel_fn, x, w, b, *, bt, tk, O, extra_inputs=(),
                    extra_in_specs=(), extra_scratch=(), transcendentals=0):
    Bp, Fk = x.shape
    nb, nk = Bp // bt, Fk // tk
    wbytes = w.dtype.itemsize

    vmem_est = (2 * (bt * tk * x.dtype.itemsize + tk * O * wbytes + O * 4)
                + 3 * bt * O * 4)
    vmem_limit = int(min(64 << 20, max(32 << 20, 2 * vmem_est)))

    cost = pl.CostEstimate(
        flops=int(2 * Bp * Fk * O),
        transcendentals=int(transcendentals),
        bytes_accessed=int(Bp * Fk * x.dtype.itemsize + nb * Fk * O * wbytes
                           + Bp * O * 4 + O * 4))

    return pl.pallas_call(
        kernel_fn,
        out_shape=jax.ShapeDtypeStruct((Bp, O), jnp.float32),
        grid=(nb, nk),
        in_specs=[
            pl.BlockSpec((bt, tk), lambda i, k: (i, k)),   # activations stream over K
            pl.BlockSpec((tk, O), lambda i, k: (k, 0)),    # weight tiles: true O width (no pad)
            pl.BlockSpec((1, O), lambda i, k: (0, 0)),     # bias, fetched once
            *extra_in_specs,
        ],
        out_specs=pl.BlockSpec((bt, O), lambda i, k: (i, 0)),   # resident across K
        scratch_shapes=[pltpu.VMEM((bt, O), jnp.float32)] + list(extra_scratch),
        compiler_params=pltpu.CompilerParams(
            dimension_semantics=("parallel", "arbitrary"),
            vmem_limit_bytes=vmem_limit),
        cost_estimate=cost,
    )(x, w, b, *extra_inputs)


def _pick_batch_tile(B, cap=BT_CAP):
    if B <= cap:
        if B >= 16 and B % 16 == 0:
            return B // 2, B          # >=2 "parallel" steps -> both v7x TensorCores busy
        return B, B                    # full-dim block is legal even when B < 8
    Bp = _round_up(B, SUBLANE)         # TODO(synk): ragged large batch pays a one-off pad
    for bt in (256, 128, 64, 32, 16, 8):
        if Bp % bt == 0:
            return bt, Bp
    return SUBLANE, Bp


def _clamp_bt_for_vmem(bt, Bp, tk, O, wbytes, budget=VMEM_BUDGET):
    def est(btv):
        return 2 * (btv * tk * 4 + tk * O * wbytes) + 3 * btv * O * 4
    while bt > SUBLANE and est(bt) > budget:
        half = bt // 2
        if half % SUBLANE or Bp % half:
            break
        bt = half
    return bt


# ---------------------------------------------------------------------------
# Offline parameter preparation (one-time): gamma/beta folding, layout, bf16.
# ---------------------------------------------------------------------------
def fold_norm_params(params, normalization, C, H, W, *, weight_dtype=jnp.bfloat16):
    HW = H * W
    F = C * HW
    w = jnp.asarray(params["fe_w"], jnp.float32)          # (F, O)
    O = int(w.shape[1])
    b = jnp.reshape(jnp.asarray(params["fe_b"], jnp.float32), (1, O))

    folded = {"normalization": normalization, "C": C, "HW": HW, "F": F, "O": O}

    if normalization == "layernorm":
        w = jnp.reshape(jnp.asarray(params["rms_gamma"], jnp.float32), (F, 1)) * w
    elif normalization == "instancenorm":
        g = jnp.repeat(jnp.asarray(params["in_gamma"], jnp.float32), HW)
        beta = jnp.repeat(jnp.asarray(params["in_beta"], jnp.float32), HW)
        b = b + jnp.reshape(beta @ w, (1, O))
        w = g.reshape(F, 1) * w

    if normalization == "instancenorm":
        HWp = _round_up(HW, LANE)
        if HWp != HW:                                      # per-channel lane pad (offline, W only)
            w = (jnp.zeros((C, HWp, O), w.dtype)
                 .at[:, :HW, :].set(w.reshape(C, HW, O))
                 .reshape(C * HWp, O))
        n_ch = max(1, min(C, TK_CAP // HWp))
        while C % n_ch:                                    # largest divisor of C <= cap
            n_ch -= 1
        # TODO(synk): for HWp > TK_CAP one channel is a single K step; sub-tiling H*W
        # with cross-tile statistics is not implemented (bt is clamped instead).
        folded.update(HWp=HWp, n_ch=n_ch, tk=n_ch * HWp, F_kernel=C * HWp)
        if HWp != HW:
            m = (jnp.arange(HWp) < HW).astype(jnp.float32)
            folded["mask"] = jnp.tile(m, n_ch).reshape(1, n_ch * HWp)
    else:
        if F <= TK_CAP:
            tk, Fp = F, F                                  # whole-F tile, no padding
        elif F % LANE == 0:
            d = TK_CAP // LANE
            while (F // LANE) % d:
                d -= 1                                     # 128-multiple divisor of F
            tk, Fp = d * LANE, F
        else:
            # TODO(synk): large ragged F still forces a one-off activation pad per call.
            Fp = _round_up(F, LANE)
            d = TK_CAP // LANE
            while (Fp // LANE) % d:
                d -= 1
            tk = d * LANE
            w = jnp.zeros((Fp, O), w.dtype).at[:F].set(w)
        folded.update(tk=tk, F_kernel=Fp)

    folded["w"] = w.astype(weight_dtype)                   # bf16 weight stream
    folded["b"] = b                                        # f32 bias
    return folded


# ---------------------------------------------------------------------------
# ArrayWrapperModel forward
# ---------------------------------------------------------------------------
def array_wrapper_forward(x_bchw, folded):
    norm = folded["normalization"]
    B = x_bchw.shape[0]
    F, O, Fk, tk = folded["F"], folded["O"], folded["F_kernel"], folded["tk"]

    if norm == "instancenorm" and folded["HWp"] != folded["HW"]:
        C, HW, HWp = folded["C"], folded["HW"], folded["HWp"]
        x_flat = (jnp.zeros((B, C, HWp), x_bchw.dtype)
                  .at[:, :, :HW].set(x_bchw.reshape(B, C, HW))
                  .reshape(B, C * HWp))
    else:
        x_flat = x_bchw.reshape(B, F)
        if Fk != F:
            x_flat = jnp.zeros((B, Fk), x_flat.dtype).at[:, :F].set(x_flat)

    bt, Bp = _pick_batch_tile(B)
    if Bp != B:
        x_flat = jnp.zeros((Bp, Fk), x_flat.dtype).at[:B].set(x_flat)
    bt = _clamp_bt_for_vmem(bt, Bp, tk, O, folded["w"].dtype.itemsize)

    if norm == "layernorm":
        kern = functools.partial(_rmsnorm_linear_kernel, inv_f=1.0 / F)
        out = _fused_pipeline(kern, x_flat, folded["w"], folded["b"],
                              bt=bt, tk=tk, O=O,
                              extra_scratch=[pltpu.VMEM((bt, 1), jnp.float32)],
                              transcendentals=Bp)
    elif norm == "instancenorm":
        use_mask = "mask" in folded
        kern = functools.partial(_instnorm_linear_kernel,
                                 n_ch=folded["n_ch"], hwp=folded["HWp"],
                                 inv_hw=1.0 / folded["HW"], use_mask=use_mask)
        extra_inputs = (folded["mask"],) if use_mask else ()
        extra_specs = ([pl.BlockSpec((1, tk), lambda i, k: (0, 0))] if use_mask else [])
        out = _fused_pipeline(kern, x_flat, folded["w"], folded["b"],
                              bt=bt, tk=tk, O=O,
                              extra_inputs=extra_inputs, extra_in_specs=extra_specs,
                              transcendentals=Bp * folded["C"])
    elif norm is None:
        out = _fused_pipeline(_linear_kernel, x_flat, folded["w"], folded["b"],
                              bt=bt, tk=tk, O=O)
    else:
        raise ValueError(norm)

    return out[:B] if Bp != B else out


# ---------------------------------------------------------------------------
# Pure-JAX reference (unfolded f32 parameters, mirrors the PyTorch module)
# ---------------------------------------------------------------------------
def ref_forward(x_bchw, params, normalization):
    B = x_bchw.shape[0]
    if normalization == "layernorm":
        ms = jnp.mean(x_bchw * x_bchw, axis=(1, 2, 3), keepdims=True)
        y = x_bchw * lax.rsqrt(ms + RMS_EPS) * params["rms_gamma"][None]
    elif normalization == "instancenorm":
        mean = jnp.mean(x_bchw, axis=(2, 3), keepdims=True)
        var = jnp.mean((x_bchw - mean) ** 2, axis=(2, 3), keepdims=True)
        y = (x_bchw - mean) * lax.rsqrt(var + IN_EPS)
        y = y * params["in_gamma"][None, :, None, None] + params["in_beta"][None, :, None, None]
    else:
        y = x_bchw
    return y.reshape(B, -1) @ params["fe_w"] + jnp.reshape(params["fe_b"], (1, -1))


if __name__ == "__main__":
    B, C, H, W = 2, 4, 16, 16
    F = C * H * W
    HIDDEN = 32

    key = jax.random.PRNGKey(0)
    kx, kw, kb, kg1, kg2, kg3 = jax.random.split(key, 6)

    x = jax.random.normal(kx, (B, C, H, W), dtype=jnp.float32)

    # Non-trivial gamma/beta (torch inits them to 1/0) so the offline folding
    # into W/b is actually exercised by the correctness check.
    params = {
        "rms_gamma": 1.0 + 0.1 * jax.random.normal(kg1, (C, H, W), jnp.float32),
        "in_gamma": 1.0 + 0.1 * jax.random.normal(kg2, (C,), jnp.float32),
        "in_beta": 0.05 * jax.random.normal(kg3, (C,), jnp.float32),
        "fe_w": jax.random.normal(kw, (F, HIDDEN), jnp.float32) * (1.0 / np.sqrt(F)),
        "fe_b": jax.random.normal(kb, (1, HIDDEN), jnp.float32) * 0.01,
    }

    for norm in ("layernorm", "instancenorm", None):
        folded = fold_norm_params(params, norm, C, H, W)
        out = array_wrapper_forward(x, folded)
        out = jax.block_until_ready(out)
        ref = ref_forward(x, params, norm)
        assert out.shape == (B, HIDDEN), (norm, out.shape)
        # bf16 weight storage: tolerance relaxed vs. the all-f32 reference.
        np.testing.assert_allclose(np.asarray(out), np.asarray(ref),
                                   rtol=2e-2, atol=2e-2)

    print("KERNEL_OK")
</pallas_src>

<mosaic_0001>
module attributes {stable_mosaic.version = 11 : i64} {
  func.func @_rmsnorm_linear_kernel(%arg0: i32, %arg1: i32, %arg2: memref<2x1024xf32, #tpu.memory_space<vmem>>, %arg3: memref<1024x32xbf16, #tpu.memory_space<vmem>>, %arg4: memref<1x32xf32, #tpu.memory_space<vmem>>, %arg5: memref<2x32xf32, #tpu.memory_space<vmem>>, %arg6: memref<2x32xf32, #tpu.memory_space<vmem>>, %arg7: memref<2x1xf32, #tpu.memory_space<vmem>>) attributes {dimension_semantics = [#tpu.dimension_semantics<parallel>, #tpu.dimension_semantics<arbitrary>], iteration_bounds = array<i64: 1, 1>, scalar_prefetch = 0 : i64, scratch_operands = 2 : i64, tpu.core_type = #tpu.core_type<tc>, window_params = [{transform_indices = @transform_0, window_bounds = array<i64: 2, 1024>}, {transform_indices = @transform_1, window_bounds = array<i64: 1024, 32>}, {pipeline_mode = #tpu.pipeline_mode<synchronous>, transform_indices = @transform_2, window_bounds = array<i64: 1, 32>}, {transform_indices = @transform_3, window_bounds = array<i64: 2, 32>}]} {
    %c0_i32 = arith.constant 0 : i32
    %0 = arith.cmpi eq, %arg1, %c0_i32 : i32
    %1 = arith.extui %0 : i1 to i32
    %c0_i32_0 = arith.constant 0 : i32
    %2 = arith.cmpi ne, %1, %c0_i32_0 : i32
    scf.if %2 {
      %cst_15 = arith.constant 0.000000e+00 : f32
      %19 = vector.broadcast %cst_15 : f32 to vector<2x32xf32>
      %c0_16 = arith.constant 0 : index
      %c0_17 = arith.constant 0 : index
      %20 = vector.load %arg6[%c0_16, %c0_17] : memref<2x32xf32, #tpu.memory_space<vmem>>, vector<2x32xf32>
      tpu.vector_store %arg6[%c0_16, %c0_17], %19 {strides = array<i32>} : memref<2x32xf32, #tpu.memory_space<vmem>>, vector<2x32xf32>,
      %cst_18 = arith.constant 0.000000e+00 : f32
      %21 = vector.broadcast %cst_18 : f32 to vector<2x1xf32>
      %c0_19 = arith.constant 0 : index
      %c0_20 = arith.constant 0 : index
      %22 = vector.load %arg7[%c0_19, %c0_20] : memref<2x1xf32, #tpu.memory_space<vmem>>, vector<2x1xf32>
      tpu.vector_store %arg7[%c0_19, %c0_20], %21 {strides = array<i32>} : memref<2x1xf32, #tpu.memory_space<vmem>>, vector<2x1xf32>,
    } else {
    }
    %c0 = arith.constant 0 : index
    %c0_1 = arith.constant 0 : index
    %3 = vector.load %arg2[%c0, %c0_1] : memref<2x1024xf32, #tpu.memory_space<vmem>>, vector<2x1024xf32>
    %c0_2 = arith.constant 0 : index
    %c0_3 = arith.constant 0 : index
    %4 = vector.load %arg6[%c0_2, %c0_3] : memref<2x32xf32, #tpu.memory_space<vmem>>, vector<2x32xf32>
    %5 = arith.truncf %3 : vector<2x1024xf32> to vector<2x1024xbf16>
    %c0_4 = arith.constant 0 : index
    %c0_5 = arith.constant 0 : index
    %6 = vector.load %arg3[%c0_4, %c0_5] : memref<1024x32xbf16, #tpu.memory_space<vmem>>, vector<1024x32xbf16>
    %cst = arith.constant dense<0.000000e+00> : vector<2x32xf32>
    %7 = tpu.matmul %5, %6, %cst {dimension_numbers = #tpu.dot_dimension_numbers<[1], [0], [0], [1], [0, 0, 1, 1], [], []>} : vector<2x1024xbf16>, vector<1024x32xbf16>, vector<2x32xf32> -> vector<2x32xf32>
    %8 = arith.addf %4, %7 : vector<2x32xf32>
    %c0_6 = arith.constant 0 : index
    %c0_7 = arith.constant 0 : index
    %9 = vector.load %arg6[%c0_6, %c0_7] : memref<2x32xf32, #tpu.memory_space<vmem>>, vector<2x32xf32>
    tpu.vector_store %arg6[%c0_6, %c0_7], %8 {strides = array<i32>} : memref<2x32xf32, #tpu.memory_space<vmem>>, vector<2x32xf32>,
    %c0_8 = arith.constant 0 : index
    %c0_9 = arith.constant 0 : index
    %10 = vector.load %arg7[%c0_8, %c0_9] : memref<2x1xf32, #tpu.memory_space<vmem>>, vector<2x1xf32>
    %11 = arith.mulf %3, %3 : vector<2x1024xf32>
    %cst_10 = arith.constant dense<0.000000e+00> : vector<2xf32>
    %12 = vector.multi_reduction <add>, %11, %cst_10 [1] : vector<2x1024xf32> to vector<2xf32>
    %13 = vector.shape_cast %12 : vector<2xf32> to vector<2x1xf32>
    %14 = arith.addf %10, %13 : vector<2x1xf32>
    %c0_11 = arith.constant 0 : index
    %c0_12 = arith.constant 0 : index
    %15 = vector.load %arg7[%c0_11, %c0_12] : memref<2x1xf32, #tpu.memory_space<vmem>>, vector<2x1xf32>
    tpu.vector_store %arg7[%c0_11, %c0_12], %14 {strides = array<i32>} : memref<2x1xf32, #tpu.memory_space<vmem>>, vector<2x1xf32>,
    %c0_i32_13 = arith.constant 0 : i32
    %16 = arith.cmpi eq, %arg1, %c0_i32_13 : i32
    %17 = arith.extui %16 : i1 to i32
    %c0_i32_14 = arith.constant 0 : i32
    %18 = arith.cmpi ne, %17, %c0_i32_14 : i32
    scf.if %18 {
      %c0_15 = arith.constant 0 : index
      %c0_16 = arith.constant 0 : index
      %19 = vector.load %arg7[%c0_15, %c0_16] : memref<2x1xf32, #tpu.memory_space<vmem>>, vector<2x1xf32>
      %cst_17 = arith.constant 9.765625E-4 : f32
      %20 = vector.broadcast %cst_17 : f32 to vector<2x1xf32>
      %21 = arith.mulf %19, %20 : vector<2x1xf32>
      %cst_18 = arith.constant 1.1920929E-7 : f32
      %22 = vector.broadcast %cst_18 : f32 to vector<2x1xf32>
      %23 = arith.addf %21, %22 : vector<2x1xf32>
      %24 = math.rsqrt %23 : vector<2x1xf32>
      %c0_19 = arith.constant 0 : index
      %c0_20 = arith.constant 0 : index
      %25 = vector.load %arg6[%c0_19, %c0_20] : memref<2x32xf32, #tpu.memory_space<vmem>>, vector<2x32xf32>
      %26 = vector.broadcast %24 : vector<2x1xf32> to vector<2x32xf32>
      %27 = arith.mulf %25, %26 : vector<2x32xf32>
      %c0_21 = arith.constant 0 : index
      %c0_22 = arith.constant 0 : index
      %28 = vector.load %arg4[%c0_21, %c0_22] : memref<1x32xf32, #tpu.memory_space<vmem>>, vector<1x32xf32>
      %29 = vector.broadcast %28 : vector<1x32xf32> to vector<2x32xf32>
      %30 = arith.addf %27, %29 : vector<2x32xf32>
      %c0_23 = arith.constant 0 : index
      %c0_24 = arith.constant 0 : index
      %31 = vector.load %arg5[%c0_23, %c0_24] : memref<2x32xf32, #tpu.memory_space<vmem>>, vector<2x32xf32>
      tpu.vector_store %arg5[%c0_23, %c0_24], %30 {strides = array<i32>} : memref<2x32xf32, #tpu.memory_space<vmem>>, vector<2x32xf32>,
    } else {
    }
    return
  }
  func.func @transform_0(%arg0: i32, %arg1: i32) -> (i32, i32) {
    %c0_i32 = arith.constant 0 : i32
    return %arg0, %arg1 : i32, i32
  }
  func.func @transform_1(%arg0: i32, %arg1: i32) -> (i32, i32) {
    %c0_i32 = arith.constant 0 : i32
    %c0_i32_0 = arith.constant 0 : i32
    return %arg1, %c0_i32 : i32, i32
  }
  func.func @transform_2(%arg0: i32, %arg1: i32) -> (i32, i32) {
    %c0_i32 = arith.constant 0 : i32
    %c0_i32_0 = arith.constant 0 : i32
    %c0_i32_1 = arith.constant 0 : i32
    return %c0_i32, %c0_i32_0 : i32, i32
  }
  func.func @transform_3(%arg0: i32, %arg1: i32) -> (i32, i32) {
    %c0_i32 = arith.constant 0 : i32
    %c0_i32_0 = arith.constant 0 : i32
    return %arg0, %c0_i32 : i32, i32
  }
}

</mosaic_0001>

<bundles_post_ra>
// kernel: tpu_custom_call.1
= control target key start
LH: loop header
LB: loop body
LE: loop exit
PB: predicated region body
PF: predicated region fallthrough
CT: control target
= control target key end

     0   :  { %v33_v15 = vlaneseq  ;;  %v1107_v20 = vmov 1983009808   ;;  %vm801_vm0 = vcmask 1041408   ;;  %vm22_vm1 = vcmask 1024   ;;  %s1360_s0 = inlined_call_operand.vmem [shape: f32[2,1024], index: 0, kind: input, shape index: {}]   ;;  %s1361_s1 = inlined_call_operand.vmem [shape: bf16[1024,32], index: 1, kind: input, shape index: {}]   ;;  %s1362_s2 = inlined_call_operand.vmem [shape: f32[1,32], index: 2, kind: input, shape index: {}]   ;;  %s1363_s3 = inlined_call_operand.hbm [shape: f32[2,32], index: 3, kind: output, shape index: {}]  }
   0x1   :  { %v1017_v0 = vld [vmem:[%s1361_s1 + $0x78] sm:$0xff]   ;;  %v1021_v4 = vld [vmem:[%s1361_s1 + $0x70] sm:$0xff]   ;;  %v1025_v8 = vld [vmem:[%s1361_s1 + $0x68] sm:$0xff]   ;;  %v31_v21 = vunpack.c.l.s4 %v1107_v20 }
   0x2   :  { %v1018_v1 = vld [vmem:[%s1361_s1 + $0x38] sm:$0xff]   ;;  %924 = vmatprep.subr.bf16.mxu0 %v1017_v0  ;;  %v1022_v5 = vld [vmem:[%s1361_s1 + $0x30] sm:$0xff]   ;;  %v1026_v9 = vld [vmem:[%s1361_s1 + $0x28] sm:$0xff]   ;;  %v34_v22 = vshrl.u32 %v33_v15, 7 }
   0x3   :  { %v1019_v2 = vld [vmem:[%s1361_s1 + $0xf8] sm:$0xff]   ;;  %925 = vmatpush3.bf16.msra.mxu0 %v1018_v1  ;;  %v1023_v6 = vld [vmem:[%s1361_s1 + $0xf0] sm:$0xff]   ;;  %v1027_v10 = vld [vmem:[%s1361_s1 + $0xe8] sm:$0xff]   ;;  %v32_v26 = vunpack.c.0.s8 %v31_v21 }
   0x4   :  { %v1020_v3 = vld [vmem:[%s1361_s1 + $0xb8] sm:$0xff]   ;;  %946 = vmatprep.subr.bf16.mxu1 %v1019_v2  ;;  %926 = vmatprep.subr.bf16.mxu0 %v1021_v4  ;;  %v1024_v7 = vld [vmem:[%s1361_s1 + $0xb0] sm:$0xff]   ;;  %v1028_v11 = vld [vmem:[%s1361_s1 + $0xa8] sm:$0xff]  }
   0x5   :  { %947 = vmatpush3.bf16.msra.mxu1 %v1020_v3  ;;  %v1029_v12 = vld [vmem:[%s1361_s1 + $0x60] sm:$0xff]   ;;  %v1033_v17 = vld [vmem:[%s1361_s1 + $0x58] sm:$0xff]   ;;  %v25_v19 = vld [vmem:[%s1360_s0 + $0x8] sm:$0xff]  ;;  %v35_v31 = vsub.s32 %v32_v26, %v34_v22 }
   0x6   :  { %948 = vmatprep.subr.bf16.mxu1 %v1023_v6  ;;  %v1030_v13 = vld [vmem:[%s1361_s1 + $0x20] sm:$0xff]   ;;  %v1034_v24 = vld [vmem:[%s1361_s1 + $0x18] sm:$0xff]   ;;  %v1037_v29 = vld [vmem:[%s1361_s1 + $0x50] sm:$0xff]   ;;  %v756_v32 = vmul.f32 %v25_v19, %v25_v19  ;;  %v46_v35 = vcombine.high %v25_v19, %v25_v19 }
   0x7   :  { %927 = vmatpush3.bf16.msra.mxu0 %v1022_v5  ;;  %v1031_v14 = vld [vmem:[%s1361_s1 + $0xe0] sm:$0xff]   ;;  %v1035_v25 = vld [vmem:[%s1361_s1 + $0xd8] sm:$0xff]   ;;  %v1038_v33 = vld [vmem:[%s1361_s1 + $0x10] sm:$0xff]   ;;  %v1215_v47 = vrot.slane %v25_v19, %v35_v31 }
   0x8   :  { %928 = vmatprep.subr.bf16.mxu0 %v1025_v8  ;;  %v1032_v16 = vld [vmem:[%s1361_s1 + $0xa0] sm:$0xff]   ;;  %v1036_v28 = vld [vmem:[%s1361_s1 + $0x98] sm:$0xff]   ;;  %v1039_v34 = vld [vmem:[%s1361_s1 + $0xd0] sm:$0xff]   ;;  %v776_v39 = vcombine.high %v756_v32, %v756_v32  ;;  %v783_v45 = vrot.slane %v756_v32, %v35_v31  ;;  %v1218_v49 = vrot.slane %v46_v35, %v35_v31  ;;  %v1108_v32 = vmov 0.0  }
   0x9   :  { %949 = vmatpush3.bf16.msra.mxu1 %v1024_v7  ;;  %v24_v18 = vld [vmem:[%s1360_s0] sm:$0xff]  ;;  %v1040_v38 = vld [vmem:[%s1361_s1 + $0x90] sm:$0xff]   ;;  %v1041_v40 = vld [vmem:[%s1361_s1 + $0x48] sm:$0xff]   ;;  %v61_v61 = vcombine.high %v1215_v47, %v1215_v47  ;;  %23 = vst.msk [vmem:[#allocation3] sm:$0x3] %vm22_vm1, %v1108_v32 }
   0xa   :  { %950 = vmatprep.subr.bf16.mxu1 %v1027_v10  ;;  %v755_v23 = vmul.f32 %v24_v18, %v24_v18  ;;  %v29_v30 = vcombine.high %v24_v18, %v24_v18  ;;  %v36_v41 = vrot.slane %v24_v18, %v35_v31  ;;  %v1042_v46 = vld [vmem:[%s1361_s1 + $0x8] sm:$0xff]   ;;  %v790_v57 = vrot.slane %v776_v39, %v35_v31  ;;  %v1045_v60 = vld [vmem:[%s1361_s1 + $0x40] sm:$0xff]   ;;  %v1053_v19 = vld [vmem:[%s1361_s1 + $0x1b8] sm:$0xff]  }
   0xb   :  { %929 = vmatpush3.bf16.msra.mxu0 %v1026_v9  ;;  %v1043_v52 = vld [vmem:[%s1361_s1 + $0xc8] sm:$0xff]   ;;  %v791_v58 = vcombine.high %v783_v45, %v783_v45  ;;  %v1046_v63 = vld [vmem:[%s1361_s1] sm:$0xff]   ;;  %v62_v2 = vcombine.high %v1218_v49, %v1218_v49  ;;  %v809_v3 = vsel %vm801_vm0, %v783_v45, 0.0  ;;  %v76_v8 = vpack.c.bf16 %v61_v61, %v61_v61  ;;  %v1054_v21 = vld [vmem:[%s1361_s1 + $0x170] sm:$0xff]  }
   0xc   :  { %930 = vmatprep.subr.bf16.mxu0 %v1029_v12  ;;  %v759_v27 = vcombine.high %v755_v23, %v755_v23  ;;  %v766_v36 = vrot.slane %v755_v23, %v35_v31  ;;  %v43_v42 = vrot.slane %v29_v30, %v35_v31  ;;  %v1044_v53 = vld [vmem:[%s1361_s1 + $0x88] sm:$0xff]   ;;  %v44_v55 = vcombine.high %v36_v41, %v36_v41  ;;  %v1047_v4 = vld [vmem:[%s1361_s1 + $0xc0] sm:$0xff]   ;;  %v1055_v23 = vld [vmem:[%s1361_s1 + $0x130] sm:$0xff]  }
   0xd   :  { %951 = vmatpush3.bf16.msra.mxu1 %v1028_v11  ;;  %v71_v5 = vpack.c.bf16 %v36_v41, %v36_v41  ;;  %v1048_v7 = vld [vmem:[%s1361_s1 + $0x80] sm:$0xff]   ;;  %v792_v9 = vcombine.high %v790_v57, %v790_v57  ;;  %v811_v10 = vsel %vm801_vm0, %v791_v58, 0.0  ;;  %v1049_v11 = vld [vmem:[%s1361_s1 + $0x178] sm:$0xff]   ;;  %v78_v15 = vpack.c.bf16 %v62_v2, %v62_v2  ;;  %v1057_v26 = vld [vmem:[%s1361_s1 + $0x1b0] sm:$0xff]  }
   0xe   :  { %952 = vmatprep.subr.bf16.mxu1 %v1031_v14  ;;  %v773_v37 = vrot.slane %v759_v27, %v35_v31  ;;  %v774_v43 = vcombine.high %v766_v36, %v766_v36  ;;  %v802_v48 = vsel %vm801_vm0, %v766_v36, 0.0  ;;  %v45_v56 = vcombine.high %v43_v42, %v43_v42  ;;  %v1050_v14 = vld [vmem:[%s1361_s1 + $0x138] sm:$0xff]   ;;  %v1058_v27 = vld [vmem:[%s1361_s1 + $0x168] sm:$0xff]   ;;  %v1062_v31 = vld [vmem:[%s1361_s1 + $0x160] sm:$0xff]  }
   0xf   :  { %931 = vmatpush3.bf16.msra.mxu0 %v1030_v13  ;;  %v72_v0 = vpack.c.bf16 %v44_v55, %v44_v55  ;;  %v73_v12 = vpack.c.bf16 %v43_v42, %v43_v42  ;;  %v815_v20 = vsel %vm801_vm0, %v792_v9, 0.0  ;;  %v1061_v30 = vld [vmem:[%s1361_s1 + $0x1a8] sm:$0xff]   ;;  %v1065_v35 = vld [vmem:[%s1361_s1 + $0x1a0] sm:$0xff]   ;;  %v1066_v36 = vld [vmem:[%s1361_s1 + $0x158] sm:$0xff]  }
  0x10   :  { %932 = vmatprep.subr.bf16.mxu0 %v1033_v17  ;;  %v775_v44 = vcombine.high %v773_v37, %v773_v37  ;;  %v803_v50 = vsel %vm801_vm0, %v774_v43, 0.0  ;;  %v805_v51 = vsel %vm801_vm0, %v773_v37, 0.0  ;;  %v74_v1 = vpack.c.bf16 %v45_v56, %v45_v56  ;;  %v1052_v17 = vld [vmem:[%s1361_s1 + $0x1f8] sm:$0xff]   ;;  %v1071_v41 = vld [vmem:[%s1361_s1 + $0x110] sm:$0xff]   ;;  %v1074_v45 = vld [vmem:[%s1361_s1 + $0x148] sm:$0xff]  }
  0x11   :  { %953 = vmatpush3.bf16.msra.mxu1 %v1032_v16  ;;  %v804_v54 = vadd.f32 %v803_v50, %v802_v48  ;;  %623 = vmatprep.mubr.bf16.mxu0 %v72_v0  ;;  %v813_v16 = vsel %vm801_vm0, %v790_v57, 0.0  ;;  %v1067_v37 = vld [vmem:[%s1361_s1 + $0x118] sm:$0xff]   ;;  %v1072_v42 = vld [vmem:[%s1361_s1 + $0x1d0] sm:$0xff]   ;;  %v1109_v43 = vmov 0   ;;  %v1076_v48 = vld [vmem:[%s1361_s1 + $0x1c8] sm:$0xff]   ;;  %v77_v56 = vpack.c.bf16 %v1218_v49, %v1218_v49 }
  0x12   :  { %954 = vmatprep.subr.bf16.mxu1 %v1035_v25  ;;  %v807_v59 = vsel %vm801_vm0, %v775_v44, 0.0  ;;  %663 = vmatprep.mubr.bf16.mxu1 %v74_v1  ;;  %v1069_v39 = vld [vmem:[%s1361_s1 + $0x198] sm:$0xff]   ;;  %v1073_v44 = vld [vmem:[%s1361_s1 + $0x190] sm:$0xff]   ;;  %v1077_v50 = vld [vmem:[%s1361_s1 + $0x188] sm:$0xff]  }
  0x13   :  { %933 = vmatpush3.bf16.msra.mxu0 %v1034_v24  ;;  %v806_v62 = vadd.f32 %v805_v51, %v804_v54  ;;  %v1056_v24 = vld [vmem:[%s1361_s1 + $0x1f0] sm:$0xff]   ;;  %1016 = vset.pattern.permute.xlu0 %v1109_v43  ;;  %v1078_v51 = vld [vmem:[%s1361_s1 + $0x140] sm:$0xff]   ;;  %v75_v54 = vpack.c.bf16 %v1215_v47, %v1215_v47 }
  0x14   :  { %934 = vmatprep.subr.bf16.mxu0 %v1037_v29  ;;  %v1060_v29 = vld [vmem:[%s1361_s1 + $0x1e8] sm:$0xff]   ;;  %v1081_v55 = vld [vmem:[%s1361_s1 + $0x180] sm:$0xff]  }
  0x15   :  { %955 = vmatpush3.bf16.msra.mxu1 %v1036_v28  ;;  %v808_v6 = vadd.f32 %v807_v59, %v806_v62  ;;  %v1059_v28 = vld [vmem:[%s1361_s1 + $0x128] sm:$0xff]  }
  0x16   :  { %956 = vmatprep.subr.bf16.mxu1 %v1039_v34  ;;  %v1064_v34 = vld [vmem:[%s1361_s1 + $0x1e0] sm:$0xff]  }
  0x17   :  { %935 = vmatpush3.bf16.msra.mxu0 %v1038_v33  ;;  %v810_v13 = vadd.f32 %v809_v3, %v808_v6  ;;  %v1063_v33 = vld [vmem:[%s1361_s1 + $0x120] sm:$0xff]  }
  0x18   :  { %936 = vmatprep.subr.bf16.mxu0 %v1041_v40  ;;  %v1070_v40 = vld [vmem:[%s1361_s1 + $0x150] sm:$0xff]  }
  0x19   :  { %957 = vmatpush3.bf16.msra.mxu1 %v1040_v38  ;;  %v812_v18 = vadd.f32 %v811_v10, %v810_v13  ;;  %v1068_v38 = vld [vmem:[%s1361_s1 + $0x1d8] sm:$0xff]  }
  0x1a   :  { %958 = vmatprep.subr.bf16.mxu1 %v1043_v52  ;;  %v1079_v52 = vld [vmem:[%s1361_s1 + $0x100] sm:$0xff]  }
  0x1b   :  { %937 = vmatpush3.bf16.msra.mxu0 %v1042_v46  ;;  %v814_v22 = vadd.f32 %v813_v16, %v812_v18  ;;  %v1075_v46 = vld [vmem:[%s1361_s1 + $0x108] sm:$0xff]  }
  0x1c   :  { %938 = vmatprep.subr.bf16.mxu0 %v1045_v60 }
  0x1d   :  { %959 = vmatpush3.bf16.msra.mxu1 %v1044_v53  ;;  %v816_v25 = vadd.f32 %v815_v20, %v814_v22  ;;  %v1080_v53 = vld [vmem:[%s1361_s1 + $0x1c0] sm:$0xff]  }
  0x1e   :  { %960 = vmatprep.subr.bf16.mxu1 %v1047_v4 }
  0x1f   :  { %939 = vmatpush3.bf16.msra.mxu0 %v1046_v63  ;;  %817 = vadd.xlane.f32.xlu0 %v816_v25 }
  0x20   :  { %968 = vmatprep.subr.bf16.mxu0 %v1049_v11 }
  0x21   :  { %961 = vmatpush3.bf16.msra.mxu1 %v1048_v7 }
  0x22   :  { %624 = vmatmul.mubr.bf16.vlgmr.msra.gmra.mxu0 %v71_v5  ;;  %990 = vmatprep.subr.bf16.mxu1 %v1052_v17 }
  0x23   :  { %969 = vmatpush3.bf16.msra.mxu0 %v1050_v14  ;;  %703 = vmatprep.mubr.bf16.mxu0 %v76_v8 }
  0x24   :  { %664 = vmatmul.mubr.bf16.vlgmr.msra.gmra.mxu1 %v73_v12  ;;  %970 = vmatprep.subr.bf16.mxu0 %v1054_v21 }
  0x25   :  { %991 = vmatpush3.bf16.msra.mxu1 %v1053_v19  ;;  %743 = vmatprep.mubr.bf16.mxu1 %v78_v15 }
  0x26   :  { %992 = vmatprep.subr.bf16.mxu1 %v1056_v24 }
  0x27   :  { %971 = vmatpush3.bf16.msra.mxu0 %v1055_v23 }
  0x28   :  { %972 = vmatprep.subr.bf16.mxu0 %v1058_v27 }
  0x29   :  { %993 = vmatpush3.bf16.msra.mxu1 %v1057_v26 }
  0x2a   :  { %994 = vmatprep.subr.bf16.mxu1 %v1060_v29 }
  0x2b   :  { %973 = vmatpush3.bf16.msra.mxu0 %v1059_v28 }
  0x2c   :  { %974 = vmatprep.subr.bf16.mxu0 %v1062_v31 }
  0x2d   :  { %995 = vmatpush3.bf16.msra.mxu1 %v1061_v30 }
  0x2e   :  { %996 = vmatprep.subr.bf16.mxu1 %v1064_v34 }
  0x2f   :  { %975 = vmatpush3.bf16.msra.mxu0 %v1063_v33 }
  0x30   :  { %976 = vmatprep.subr.bf16.mxu0 %v1066_v36 }
  0x31   :  { %997 = vmatpush3.bf16.msra.mxu1 %v1065_v35 }
  0x32   :  { %998 = vmatprep.subr.bf16.mxu1 %v1068_v38 }
  0x33   :  { %977 = vmatpush3.bf16.msra.mxu0 %v1067_v37 }
  0x34   :  { %978 = vmatprep.subr.bf16.mxu0 %v1070_v40 }
  0x35   :  { %999 = vmatpush3.bf16.msra.mxu1 %v1069_v39 }
  0x36   :  { %1000 = vmatprep.subr.bf16.mxu1 %v1072_v42 }
  0x37   :  { %979 = vmatpush3.bf16.msra.mxu0 %v1071_v41 }
  0x38   :  { %980 = vmatprep.subr.bf16.mxu0 %v1074_v45 }
  0x39   :  { %1001 = vmatpush3.bf16.msra.mxu1 %v1073_v44 }
  0x3a   :  { %1002 = vmatprep.subr.bf16.mxu1 %v1076_v48 }
  0x3b   :  { %981 = vmatpush3.bf16.msra.mxu0 %v1075_v46 }
  0x3c   :  { %982 = vmatprep.subr.bf16.mxu0 %v1078_v51 }
  0x3d   :  { %1003 = vmatpush3.bf16.msra.mxu1 %v1077_v50 }
  0x3e   :  { %1004 = vmatprep.subr.bf16.mxu1 %v1080_v53 }
  0x3f   :  { %983 = vmatpush3.bf16.msra.mxu0 %v1079_v52 }
  0x40   :  { %8 = vsyncpa [#allocation5], 0  ;;  %vm20_vm2 = vcmask 254976   ;;  %v754_v57 = vld [vmem:[#allocation3] sm:$0x3]  ;;  %s1110_s6 = smov [#allocation4]  }
  0x41   :  { %1005 = vmatpush3.bf16.msra.mxu1 %v1081_v55  ;;  %21 = vst.msk [vmem:[#allocation2] sm:$0x3] %vm20_vm2, %v1108_v32  ;;  %v923_v23 = vld [vmem:[%s1362_s2] ss:$0 sm:$0xff]  ;;  %s851_s7 = sshll.u32 %s1110_s6, 4  ;;  %s852_s7 = int_to_ptr.vmem [resolvable:$true] %s851_s7 }
  0x42   :  { %704 = vmatmul.mubr.bf16.vlgmr.msra.gmra.mxu0 %v75_v54  ;;  %s1085_s8 = scalar_lea.vmem %s852_s7, 32  ;;  %p1090_p1 = scmp.lt.s32.totalorder %s852_s7, %s852_s7 }
  0x43   :  { %p1086_p0 = scmp.ne.s32.totalorder %s852_s7, %s1085_s8  ;;  %p1091_p2 = scmp.lt.s32.totalorder %s1085_s8, %s1085_s8 }
  0x44   :  { %744 = vmatmul.mubr.bf16.vlgmr.msra.gmra.mxu1 %v77_v56 }
  0x45   :  { %p1092_p3 = por %p1091_p2, %p1090_p1 }
  0x47   :  { %p1093_p4 = pnand %p1092_p3, %p1086_p0 }
  0x48   :  { %v26_v19 = vld [vmem:[#allocation2] sm:$0x3] }
  0xa8   :  { %v818_v58 = vpop.xlane.xlu0 %817 }
  0xa9   :  { %v819_v59 = vadd.f32 %v818_v58, %v754_v57 }
  0xab   :  { %821 = vst.msk [vmem:[#allocation3] sm:$0x3] %vm22_vm1, %v819_v59 }
  0xb2   :  { %v825_v47 = vld [vmem:[#allocation3] sm:$0x3] }
  0xb3   :  { %v826_v60 = vmul.f32 0.0009765625, %v825_v47 }
  0xb5   :  { %v827_v61 = vadd.f32 1.1920929e-07, %v826_v60 }
  0xb7   :  { %1083 = vrsqrt.f32 %v827_v61 }
  0xc4   :  { %v1084_v62 = vpop.eup %1083 }
  0xc5   :  { %832 = vperm.xlu0 %1016, %v1084_v62  }
  0xe2   :  { %v940_v63 = vpop.f32.mrf.mxu0 }
  0xe4   :  { %v941_v49 = vpop.f32.mrf.mxu0  ;;  %v962_v0 = vpop.f32.mrf.mxu1 }
  0xe5   :  { %v942_v6 = vadd.f32 %v941_v49, %v940_v63 }
  0xe6   :  { %v943_v1 = vpop.f32.mrf.mxu0  ;;  %v963_v2 = vpop.f32.mrf.mxu1 }
  0xe7   :  { %v964_v7 = vadd.f32 %v963_v2, %v962_v0 }
  0xe8   :  { %v944_v3 = vpop.f32.mrf.mxu0  ;;  %v965_v4 = vpop.f32.mrf.mxu1 }
  0xe9   :  { %v666_v9 = vadd.f32 %v964_v7, %v942_v6 }
  0xea   :  { %v966_v5 = vpop.f32.mrf.mxu1 }
 0x102   :  { %v984_v8 = vpop.f32.mrf.mxu0 }
 0x104   :  { %v985_v10 = vpop.f32.mrf.mxu0  ;;  %v1006_v11 = vpop.f32.mrf.mxu1 }
 0x105   :  { %v986_v12 = vadd.f32 %v985_v10, %v984_v8 }
 0x106   :  { %v1007_v13 = vpop.f32.mrf.mxu1  ;;  %v987_v14 = vpop.f32.mrf.mxu0 }
 0x107   :  { %v706_v15 = vadd.f32 %v986_v12, %v666_v9  ;;  %v1008_v16 = vadd.f32 %v1007_v13, %v1006_v11 }
 0x108   :  { %v988_v17 = vpop.f32.mrf.mxu0  ;;  %v1009_v18 = vpop.f32.mrf.mxu1 }
 0x109   :  { %v746_v20 = vadd.f32 %v1008_v16, %v706_v15 }
 0x10a   :  { %v1010_v21 = vpop.f32.mrf.mxu1 }
 0x10b   :  { %v751_v22 = vadd.f32 %v746_v20, %v26_v19 }
 0x10d   :  { %753 = vst.msk [vmem:[#allocation2] sm:$0x3] %vm20_vm2, %v751_v22 }
 0x114   :  { %v829_v25 = vld [vmem:[#allocation2] sm:$0x3] }
 0x140   :  { %v833_v24 = vpop.permute.xlu0 %832 }
 0x141   :  { %v835_v26 = vmul.f32 %v833_v24, %v829_v25 }
 0x143   :  { %v843_v27 = vadd.f32 %v923_v23, %v835_v26 }
 0x145   :  { %844 = vst.msk [vmem:[#allocation4] sm:$0x3] %vm20_vm2, %v843_v27 }
 0x146   :  { %1096 = shalt.err (!%p1093_p4)
}
 0x147   :  { %854 = dma.vmem_to_hbm [thread:$0]  %s852_s7, 32, %s1363_s3, [#allocation5]  }
 0x148   :  { %1105 = dma.done.wait [#allocation5], 32  }
 0x149   :  { %1106 = vsyncadd [#allocation5], 4294967264 }
 0x14a   :  { %858 = vsyncpa [#allocation5], 1 }

</bundles_post_ra>
